<compile_context>
chip_gen: v5e
topology: v5e:2x2
jax: 0.10.0
libtpu: 0.0.40
codegen_flags: <defaults>
</compile_context>

<pallas_src>
import jax
import jax.numpy as jnp
from jax.experimental import pallas as pl
from jax.experimental.pallas import tpu as pltpu

# ---------------- problem sizes (batch=2, seq=8 -> N=16 rows; vocab "size"=128) --
BATCH = 2
SEQ = 8
N = BATCH * SEQ            # number of (flattened) token rows in x
V = 128                    # vocabulary size == LabelSmoothing "size" (lane-dense)
PADDING_IDX = 0
SMOOTHING = 0.1
CONFIDENCE = 1.0 - SMOOTHING
SMOOTH_VAL = SMOOTHING / (V - 2)
EPSILON = 0.0  # (unused; kept for clarity that no eps is needed here)


# ----------------------- Pallas kernel -----------------------
def label_smoothing_kernel(x_ref, tgt_ref, loss_ref, td_ref):
    x = x_ref[...]                               # (N, V) f32 log-probabilities
    tgt = tgt_ref[...]                           # (N, 1) int32 labels

    # Build the smoothed target distribution with vector ops only.
    col = jax.lax.broadcasted_iota(jnp.int32, (N, V), 1)
    td = jnp.where(col == tgt, CONFIDENCE, SMOOTH_VAL).astype(jnp.float32)
    td = jnp.where(col == PADDING_IDX, 0.0, td)          # zero padding column
    td = jnp.where(tgt == PADDING_IDX, 0.0, td)          # zero rows whose target is pad

    # KLDivLoss(reduction='sum'): sum( td * (log(td) - x) ), with 0*log(0) := 0.
    safe_td = jnp.where(td > 0.0, td, 1.0)               # log(1) = 0 keeps masked terms at 0
    kl = td * (jnp.log(safe_td) - x)

    td_ref[...] = td                                     # mirrors self.true_dist
    loss_ref[0, 0] = jnp.sum(kl)                         # scalar loss -> SMEM


# ----------------------- wrapper -----------------------
def label_smoothing(x, target):
    """Returns (loss, true_dist): loss is the module's return value,
    true_dist mirrors the module's stored self.true_dist."""
    tgt2d = target.astype(jnp.int32).reshape(N, 1)
    loss, true_dist = pl.pallas_call(
        label_smoothing_kernel,
        out_shape=(
            jax.ShapeDtypeStruct((1, 1), jnp.float32),   # KL-div sum (scalar)
            jax.ShapeDtypeStruct((N, V), jnp.float32),   # true_dist (lane-dense)
        ),
        in_specs=[
            pl.BlockSpec(memory_space=pltpu.MemorySpace.VMEM),   # x (N, V)
            pl.BlockSpec(memory_space=pltpu.MemorySpace.VMEM),   # target (N, 1)
        ],
        out_specs=(
            pl.BlockSpec(memory_space=pltpu.MemorySpace.SMEM),   # scalar loss
            pl.BlockSpec(memory_space=pltpu.MemorySpace.VMEM),   # true_dist
        ),
    )(x, tgt2d)
    return loss[0, 0], true_dist


# ----------------------- pure-JAX reference -----------------------
def reference(x, target):
    td = jnp.full((N, V), SMOOTH_VAL, jnp.float32)
    td = td.at[jnp.arange(N), target].set(CONFIDENCE)
    td = td.at[:, PADDING_IDX].set(0.0)
    td = jnp.where((target == PADDING_IDX)[:, None], 0.0, td)
    safe = jnp.where(td > 0.0, td, 1.0)
    loss = jnp.sum(td * (jnp.log(safe) - x))
    return loss, td


# ----------------------- main -----------------------
if __name__ == "__main__":
    key = jax.random.PRNGKey(0)
    k1, k2 = jax.random.split(key)

    # x is expected to be log-probabilities (input to KLDivLoss).
    logits = jax.random.normal(k1, (N, V), dtype=jnp.float32)
    x = jax.nn.log_softmax(logits, axis=-1)

    target = jax.random.randint(k2, (N,), 1, V, dtype=jnp.int32)
    target = target.at[3].set(PADDING_IDX)      # exercise the index_fill_ (padded rows)
    target = target.at[10].set(PADDING_IDX)

    loss, true_dist = label_smoothing(x, target)
    loss = jax.block_until_ready(loss)

    ref_loss, ref_td = reference(x, target)
    assert true_dist.shape == (N, V)
    assert jnp.allclose(true_dist, ref_td, atol=1e-6, rtol=1e-6), \
        f"true_dist max diff {jnp.max(jnp.abs(true_dist - ref_td))}"
    assert jnp.allclose(loss, ref_loss, atol=1e-4, rtol=1e-4), \
        f"loss {loss} vs ref {ref_loss}"

    print("KERNEL_OK")
</pallas_src>

<mosaic_0001>
module attributes {stable_mosaic.version = 11 : i64} {
  func.func @label_smoothing_kernel(%arg0: memref<16x128xf32, #tpu.memory_space<vmem>>, %arg1: memref<16x1xi32, #tpu.memory_space<vmem>>, %arg2: memref<1x1xf32, #tpu.memory_space<smem>>, %arg3: memref<16x128xf32, #tpu.memory_space<vmem>>) attributes {dimension_semantics = [], scalar_prefetch = 0 : i64, scratch_operands = 0 : i64, tpu.core_type = #tpu.core_type<tc>} {
    %c0 = arith.constant 0 : index
    %c0_0 = arith.constant 0 : index
    %0 = vector.load %arg0[%c0, %c0_0] : memref<16x128xf32, #tpu.memory_space<vmem>>, vector<16x128xf32>
    %c0_1 = arith.constant 0 : index
    %c0_2 = arith.constant 0 : index
    %1 = vector.load %arg1[%c0_1, %c0_2] : memref<16x1xi32, #tpu.memory_space<vmem>>, vector<16x1xi32>
    %2 = tpu.iota {dimensions = array<i32: 1>} : vector<16x128xi32>
    %3 = vector.broadcast %1 : vector<16x1xi32> to vector<16x128xi32>
    %4 = arith.cmpi eq, %2, %3 : vector<16x128xi32>
    %cst = arith.constant 0.899999976 : f32
    %cst_3 = arith.constant 7.93650805E-4 : f32
    %5 = vector.broadcast %cst : f32 to vector<16x128xf32>
    %6 = vector.broadcast %cst_3 : f32 to vector<16x128xf32>
    %7 = arith.select %4, %5, %6 : vector<16x128xi1>, vector<16x128xf32>
    %c0_i32 = arith.constant 0 : i32
    %8 = vector.broadcast %c0_i32 : i32 to vector<16x128xi32>
    %9 = arith.cmpi eq, %2, %8 : vector<16x128xi32>
    %cst_4 = arith.constant 0.000000e+00 : f32
    %10 = vector.broadcast %cst_4 : f32 to vector<16x128xf32>
    %11 = arith.select %9, %10, %7 : vector<16x128xi1>, vector<16x128xf32>
    %c0_i32_5 = arith.constant 0 : i32
    %12 = vector.broadcast %c0_i32_5 : i32 to vector<16x1xi32>
    %13 = arith.cmpi eq, %1, %12 : vector<16x1xi32>
    %cst_6 = arith.constant 0.000000e+00 : f32
    %14 = vector.shape_cast %13 : vector<16x1xi1> to vector<16x1xi1>
    %15 = vector.broadcast %14 : vector<16x1xi1> to vector<16x128xi1>
    %16 = vector.broadcast %cst_6 : f32 to vector<16x128xf32>
    %17 = arith.select %15, %16, %11 : vector<16x128xi1>, vector<16x128xf32>
    %cst_7 = arith.constant 0.000000e+00 : f32
    %18 = vector.broadcast %cst_7 : f32 to vector<16x128xf32>
    %19 = arith.cmpf ogt, %17, %18 : vector<16x128xf32>
    %cst_8 = arith.constant 1.000000e+00 : f32
    %20 = vector.broadcast %cst_8 : f32 to vector<16x128xf32>
    %21 = arith.select %19, %17, %20 : vector<16x128xi1>, vector<16x128xf32>
    %22 = math.log %21 : vector<16x128xf32>
    %23 = arith.subf %22, %0 : vector<16x128xf32>
    %24 = arith.mulf %17, %23 : vector<16x128xf32>
    %c0_9 = arith.constant 0 : index
    %c0_10 = arith.constant 0 : index
    %25 = vector.load %arg3[%c0_9, %c0_10] : memref<16x128xf32, #tpu.memory_space<vmem>>, vector<16x128xf32>
    tpu.vector_store %arg3[%c0_9, %c0_10], %17 {strides = array<i32>} : memref<16x128xf32, #tpu.memory_space<vmem>>, vector<16x128xf32>,
    %26 = vector.shape_cast %24 : vector<16x128xf32> to vector<1x16x128xf32>
    %cst_11 = arith.constant dense<0.000000e+00> : vector<1xf32>
    %27 = vector.multi_reduction <add>, %26, %cst_11 [1, 2] : vector<1x16x128xf32> to vector<1xf32>
    %28 = vector.shape_cast %27 : vector<1xf32> to vector<1x1x1xf32>
    %29 = vector.extract %28[0, 0, 0] : f32 from vector<1x1x1xf32>
    %c0_12 = arith.constant 0 : index
    %c0_13 = arith.constant 0 : index
    %30 = memref.load %arg2[%c0_12, %c0_13] : memref<1x1xf32, #tpu.memory_space<smem>>
    memref.store %29, %arg2[%c0_12, %c0_13] : memref<1x1xf32, #tpu.memory_space<smem>>
    return
  }
}

</mosaic_0001>

<bundles_post_ra>
// kernel: tpu_custom_call.1
= control target key start
LH: loop header
LB: loop body
LE: loop exit
PB: predicated region body
PF: predicated region fallthrough
CT: control target
= control target key end

     0   :  { %9 = vsyncpa [#allocation4], 0  ;;  %v161_v1 = vmov 0   ;;  %s207_s0 = inlined_call_operand.vmem [shape: f32[16,128], index: 0, kind: input, shape index: {}]   ;;  %s208_s1 = inlined_call_operand.vmem [shape: s32[16,1], index: 1, kind: input, shape index: {}]   ;;  %s209_s2 = inlined_call_operand.hbm [shape: f32[1,1], index: 2, kind: output, shape index: {0}]   ;;  %s210_s3 = inlined_call_operand.hbm [shape: f32[16,128], index: 3, kind: output, shape index: {1}]  }
   0x1   :  { %v17_v0 = vld [vmem:[%s208_s1] sm:$0xff]  ;;  %115 = vset.pattern.permute.xlu0 %v161_v1  ;;  %116 = vset.pattern.permute.xlu1 %v161_v1 }
   0x2   :  { %vm34_vm0 = vcmp.eq.s32.totalorder %v17_v0, 0 }
   0x3   :  { %10 = vsyncpa [#allocation3], 0  ;;  %22 = vperm.xlu0 %115, %v17_v0   ;;  %v36_v2 = vsel %vm34_vm0, 1, %v161_v1  ;;  %v18_v3 = vld [vmem:[%s208_s1 + $0x8] sm:$0xff]  ;;  %v19_v5 = vlaneseq  ;;  %v162_v9 = vmov 0.0007936508  }
   0x4   :  { %39 = vperm.xlu1 %116, %v36_v2   ;;  %vm35_vm1 = vcmp.eq.s32.totalorder %v18_v3, 0  ;;  %v15_v22 = vld [vmem:[%s207_s0] sm:$0xff]  ;;  %v16_v24 = vld [vmem:[%s207_s0 + $0x8] sm:$0xff]  ;;  %s163_s19 = smov [#allocation5]   ;;  %s89_s23 = sshll.u32 %s210_s3, 4  ;;  %s90_s23 = int_to_ptr.hbm [resolvable:$true] %s89_s23 }
   0x5   :  { %v37_v4 = vsel %vm35_vm1, 1, %v161_v1  ;;  %v20_v6 = vand.u32 127, %v19_v5  ;;  %s87_s20 = sshll.u32 %s163_s19, 4  ;;  %s164_s24 = smov 128   ;;  %s88_s20 = int_to_ptr.vmem [resolvable:$true] %s87_s20 }
   0x6   :  { %s165_s25 = smov 8   ;;  %s79_s27 = sshll.u32 %s209_s2, 4  ;;  %s80_s27 = int_to_ptr.hbm [resolvable:$true] %s79_s27 }
   0x7   :  { %vm31_vm2 = vcmp.eq.s32.totalorder %v20_v6, 0  ;;  %s166_s3 = smov [#allocation2]  }
   0xb   :  { %25 = vperm.xlu0 %115, %v18_v3  }
   0xc   :  { %42 = vperm.xlu1 %116, %v37_v4  }
  0x75   :  { %v23_v7 = vpop.permute.xlu0 %22 }
  0x76   :  { %vm27_vm3 = vcmp.eq.s32.totalorder %v20_v6, %v23_v7  ;;  %v40_v8 = vpop.permute.xlu1 %39 }
  0x77   :  { %v29_v10 = vsel %vm27_vm3, 0.9, %v162_v9  ;;  %vm44_vm4 = vcmp.eq.s32.totalorder %v40_v8, 1 }
  0x78   :  { %v32_v11 = vsel %vm31_vm2, 0.0, %v29_v10 }
  0x79   :  { %v46_v12 = vsel %vm44_vm4, 0.0, %v32_v11 }
  0x7a   :  { %vm48_vm5 = vcmp.gt.f32.partialorder %v46_v12, 0.0  ;;  %60 = vst [vmem:[#allocation5] sm:$0xff] %v46_v12 }
  0x7b   :  { %v50_v13 = vsel %vm48_vm5, %v46_v12, 1.0 }
  0x7c   :  { %117 = vlog2.f32 %v50_v13 }
  0x7d   :  { %v26_v14 = vpop.permute.xlu0 %25 }
  0x7e   :  { %vm28_vm6 = vcmp.eq.s32.totalorder %v20_v6, %v26_v14  ;;  %v43_v15 = vpop.permute.xlu1 %42 }
  0x7f   :  { %v30_v16 = vsel %vm28_vm6, 0.9, %v162_v9  ;;  %vm45_vm7 = vcmp.eq.s32.totalorder %v43_v15, 1 }
  0x80   :  { %v33_v17 = vsel %vm31_vm2, 0.0, %v30_v16 }
  0x81   :  { %v47_v18 = vsel %vm45_vm7, 0.0, %v33_v17 }
  0x82   :  { %vm49_vm8 = vcmp.gt.f32.partialorder %v47_v18, 0.0  ;;  %61 = vst [vmem:[#allocation5 + $0x8] sm:$0xff] %v47_v18  ;;  %v118_v20 = vpop.eup %117 }
  0x83   :  { %v51_v19 = vsel %vm49_vm8, %v47_v18, 1.0  ;;  %v53_v21 = vmul.f32 0.6931472, %v118_v20  ;;  %95 = dma.vmem_to_hbm [thread:$0]  %s88_s20, 256, %s90_s23, [#allocation3], %s164_s24, %s164_s24, %s165_s25  }
  0x84   :  { %119 = vlog2.f32 %v51_v19 }
  0x85   :  { %v56_v26 = vsub.f32 %v53_v21, %v15_v22 }
  0x87   :  { %v58_v28 = vmul.f32 %v56_v26, %v46_v12 }
  0x8a   :  { %v120_v23 = vpop.eup %119 }
  0x8b   :  { %v55_v25 = vmul.f32 0.6931472, %v120_v23 }
  0x8d   :  { %v57_v27 = vsub.f32 %v55_v25, %v16_v24 }
  0x8f   :  { %v59_v29 = vmul.f32 %v57_v27, %v47_v18 }
  0x91   :  { %v62_v30 = vadd.f32 %v59_v29, %v58_v28 }
  0x93   :  { %63 = vadd.xlane.f32.xlu2 %v62_v30 }
 0x106   :  { %v64_v31 = vpop.xlane.xlu2 %63 }
 0x107   :  { %v65_v32 = vrot.slane %v64_v31, 4 }
 0x109   :  { %v66_v33 = vadd.f32 %v65_v32, %v64_v31 }
 0x10b   :  { %v67_v34 = vrot.slane %v66_v33, 2 }
 0x10d   :  { %v68_v35 = vadd.f32 %v67_v34, %v66_v33 }
 0x10f   :  { %v69_v36 = vrot.slane %v68_v35, 1 }
 0x111   :  { %v70_v37 = vadd.f32 %v69_v36, %v68_v35 }
 0x113   :  { %107 = vpush %v70_v37 }
 0x144   :  { %s108_s28 = spop %107 }
 0x145   :  { %73 = sst [smem:[#allocation2]] %s108_s28 }
 0x146   :  { %82 = dma.smem_to_hbm %s166_s3, 16, %s80_s27, [#allocation4]  }
 0x147   :  { %157 = dma.done.wait [#allocation4], 16  }
 0x148   :  { %158 = vsyncadd [#allocation4], 4294967280 }
 0x149   :  { %159 = dma.done.wait [#allocation3], 256  }
 0x14a   :  { %160 = vsyncadd [#allocation3], 4294967040 }
 0x14b   :  { %104 = sfence }
 0x14c   :  { %105 = vsyncpa [#allocation3], 1 }
 0x14d   :  { %106 = vsyncpa [#allocation4], 1 }

</bundles_post_ra>
